<compile_context>
chip_gen: v6e
topology: v6e:2x2x1
jax: 0.10.0
libtpu: 0.0.40
codegen_flags: <defaults>
</compile_context>

<pallas_src>
import functools

import jax
import jax.numpy as jnp
from jax.experimental import pallas as pl
from jax.experimental.pallas import tpu as pltpu


def lstm_fc_kernel(seq_len, hidden_size,
                   x_ref, wih_ref, whh_ref, b_ref, wfc_ref, bfc_ref, out_ref):
    """Whole forward pass, single invocation, everything resident in VMEM.

    x_ref   : (T*B, F)   t-major flattened inputs (row = t*B + b)
    wih_ref : (F, 4H)    W_ih^T   (PyTorch gate order i, f, g, o)
    whh_ref : (H, 4H)    W_hh^T
    b_ref   : (1, 4H)    b_ih + b_hh
    wfc_ref : (T*H, O)   fc weight transposed (t-major flatten layout)
    bfc_ref : (1, O)     fc bias
    out_ref : (B, O)
    """
    T = seq_len
    H = hidden_size
    B = out_ref.shape[0]
    O = out_ref.shape[1]

    # Hoisted input projection: ONE MXU matmul covering all timesteps, off the
    # serial recurrence chain. Gate bias folded in via sublane broadcast.
    xproj = (jnp.dot(x_ref[...], wih_ref[...],
                     preferred_element_type=jnp.float32)
             + b_ref[...])                                          # (T*B, 4H)

    whh = whh_ref[...]                                              # (H, 4H)

    h = jnp.zeros((B, H), jnp.float32)      # hidden_state init (zeros, as in __init__)
    c = jnp.zeros((B, H), jnp.float32)      # cell_state init (zeros)
    out_acc = jnp.zeros((B, O), jnp.float32)

    for t in range(T):                      # static unroll: T known at trace time
        gates = xproj[t * B:(t + 1) * B, :] + jnp.dot(
            h, whh, preferred_element_type=jnp.float32)             # (B, 4H)

        sig = jax.nn.sigmoid(gates)
        i_g = sig[:, 0 * H:1 * H]
        f_g = sig[:, 1 * H:2 * H]
        o_g = sig[:, 3 * H:4 * H]
        g_g = jnp.tanh(gates[:, 2 * H:3 * H])

        c = f_g * c + i_g * g_g
        h = o_g * jnp.tanh(c)

        # FC accumulated in-loop (replaces the (B, T*H) lane concat): the
        # (B,H)@(H,O) matmul slices wfc at 8-aligned sublane offsets t*H.
        out_acc = out_acc + jnp.dot(h, wfc_ref[t * H:(t + 1) * H, :],
                                    preferred_element_type=jnp.float32)

    # TODO(synk): nn.Dropout(p=0.2) is identity in eval mode; training-mode
    # stochastic masking is intentionally not reproduced here.
    out_ref[...] = out_acc + bfc_ref[...]


def pack_params(w_ih, w_hh, b_ih, b_hh, w_fc, b_fc):
    """One-time parameter packing. Call once at model-load time (outside jit)."""
    w_ih_t = jnp.transpose(w_ih).astype(jnp.float32)          # (F, 4H)
    w_hh_t = jnp.transpose(w_hh).astype(jnp.float32)          # (H, 4H)
    b_gate = (b_ih + b_hh).reshape(1, -1).astype(jnp.float32)  # (1, 4H)
    w_fc_t = jnp.transpose(w_fc).astype(jnp.float32)          # (T*H, O)
    b_fc2 = b_fc.reshape(1, -1).astype(jnp.float32)           # (1, O)
    return w_ih_t, w_hh_t, b_gate, w_fc_t, b_fc2


@jax.jit
def leads_predictor_forward(x_btf, packed):
    """x_btf: (batch, seq, features) — PyTorch batch_first input."""
    w_ih_t, w_hh_t, b_gate, w_fc_t, b_fc2 = packed
    B, T, F = x_btf.shape
    H = w_hh_t.shape[0]
    O = w_fc_t.shape[1]

    # Per-call input layout only: batch_first (B,T,F) -> t-major (T*B, F).
    x2d = jnp.transpose(x_btf, (1, 0, 2)).reshape(T * B, F).astype(jnp.float32)

    kernel = functools.partial(lstm_fc_kernel, T, H)
    vmem = pltpu.MemorySpace.VMEM

    return pl.pallas_call(
        kernel,
        out_shape=jax.ShapeDtypeStruct((B, O), jnp.float32),
        # No grid: single resident invocation, whole arrays as VMEM blocks
        # (no double-buffered windows, no pipeline prologue/epilogue).
        in_specs=[pl.BlockSpec(memory_space=vmem)] * 6,
        out_specs=pl.BlockSpec(memory_space=vmem),
    )(x2d, w_ih_t, w_hh_t, b_gate, w_fc_t, b_fc2)


def _reference_forward(x_btf, w_ih, w_hh, b_ih, b_hh, w_fc, b_fc):
    """Pure-JAX reference matching torch.nn.LSTM(batch_first) + Linear (eval dropout)."""
    B, T, F = x_btf.shape
    H = w_hh.shape[1]
    h = jnp.zeros((B, H), jnp.float32)
    c = jnp.zeros((B, H), jnp.float32)
    hs = []
    for t in range(T):
        g = x_btf[:, t, :] @ w_ih.T + h @ w_hh.T + b_ih + b_hh
        i = jax.nn.sigmoid(g[:, 0 * H:1 * H])
        f = jax.nn.sigmoid(g[:, 1 * H:2 * H])
        gg = jnp.tanh(g[:, 2 * H:3 * H])
        o = jax.nn.sigmoid(g[:, 3 * H:4 * H])
        c = f * c + i * gg
        h = o * jnp.tanh(c)
        hs.append(h)
    flat = jnp.concatenate(hs, axis=-1)                         # (B, T*H), t-major
    return flat @ w_fc.T + b_fc


if __name__ == "__main__":
    # Module hyperparameters (small, consistent with the PyTorch __init__).
    num_features, seq_len, batch_size, hidden_size, output_size = 4, 8, 2, 32, 16

    key = jax.random.PRNGKey(0)
    ks = jax.random.split(key, 7)
    scale = 1.0 / jnp.sqrt(hidden_size)
    x = jax.random.normal(ks[0], (batch_size, seq_len, num_features), jnp.float32)
    w_ih = jax.random.uniform(ks[1], (4 * hidden_size, num_features), jnp.float32, -scale, scale)
    w_hh = jax.random.uniform(ks[2], (4 * hidden_size, hidden_size), jnp.float32, -scale, scale)
    b_ih = jax.random.uniform(ks[3], (4 * hidden_size,), jnp.float32, -scale, scale)
    b_hh = jax.random.uniform(ks[4], (4 * hidden_size,), jnp.float32, -scale, scale)
    w_fc = jax.random.uniform(ks[5], (output_size, hidden_size * seq_len), jnp.float32, -scale, scale)
    b_fc = jax.random.uniform(ks[6], (output_size,), jnp.float32, -scale, scale)

    packed = pack_params(w_ih, w_hh, b_ih, b_hh, w_fc, b_fc)   # one-time pack
    packed = jax.tree_util.tree_map(jax.block_until_ready, packed)

    out = leads_predictor_forward(x, packed)
    out = jax.block_until_ready(out)

    ref = _reference_forward(x, w_ih, w_hh, b_ih, b_hh, w_fc, b_fc)
    assert out.shape == (batch_size, output_size)
    assert jnp.allclose(out, ref, atol=1e-4, rtol=1e-4), "mismatch vs reference"

    print("KERNEL_OK")
</pallas_src>

<mosaic_0001>
module attributes {stable_mosaic.version = 11 : i64} {
  func.func @lstm_fc_kernel(%arg0: memref<16x4xf32, #tpu.memory_space<vmem>>, %arg1: memref<4x128xf32, #tpu.memory_space<vmem>>, %arg2: memref<32x128xf32, #tpu.memory_space<vmem>>, %arg3: memref<1x128xf32, #tpu.memory_space<vmem>>, %arg4: memref<256x16xf32, #tpu.memory_space<vmem>>, %arg5: memref<1x16xf32, #tpu.memory_space<vmem>>, %arg6: memref<2x16xf32, #tpu.memory_space<vmem>>) attributes {dimension_semantics = [], scalar_prefetch = 0 : i64, scratch_operands = 0 : i64, tpu.core_type = #tpu.core_type<tc>} {
    %c0 = arith.constant 0 : index
    %c0_0 = arith.constant 0 : index
    %0 = vector.load %arg0[%c0, %c0_0] : memref<16x4xf32, #tpu.memory_space<vmem>>, vector<16x4xf32>
    %c0_1 = arith.constant 0 : index
    %c0_2 = arith.constant 0 : index
    %1 = vector.load %arg1[%c0_1, %c0_2] : memref<4x128xf32, #tpu.memory_space<vmem>>, vector<4x128xf32>
    %cst = arith.constant dense<0.000000e+00> : vector<16x128xf32>
    %2 = tpu.matmul %0, %1, %cst {dimension_numbers = #tpu.dot_dimension_numbers<[1], [0], [0], [1], [0, 0, 1, 1], [], []>} : vector<16x4xf32>, vector<4x128xf32>, vector<16x128xf32> -> vector<16x128xf32>
    %c0_3 = arith.constant 0 : index
    %c0_4 = arith.constant 0 : index
    %3 = vector.load %arg3[%c0_3, %c0_4] : memref<1x128xf32, #tpu.memory_space<vmem>>, vector<1x128xf32>
    %4 = vector.broadcast %3 : vector<1x128xf32> to vector<16x128xf32>
    %5 = arith.addf %2, %4 : vector<16x128xf32>
    %c0_5 = arith.constant 0 : index
    %c0_6 = arith.constant 0 : index
    %6 = vector.load %arg2[%c0_5, %c0_6] : memref<32x128xf32, #tpu.memory_space<vmem>>, vector<32x128xf32>
    %cst_7 = arith.constant 0.000000e+00 : f32
    %7 = vector.broadcast %cst_7 : f32 to vector<2x32xf32>
    %cst_8 = arith.constant 0.000000e+00 : f32
    %8 = vector.broadcast %cst_8 : f32 to vector<2x32xf32>
    %cst_9 = arith.constant 0.000000e+00 : f32
    %9 = vector.broadcast %cst_9 : f32 to vector<2x16xf32>
    %10 = vector.extract_strided_slice %5 {offsets = [0, 0], sizes = [2, 128], strides = [1, 1]} : vector<16x128xf32> to vector<2x128xf32>
    %cst_10 = arith.constant dense<0.000000e+00> : vector<2x128xf32>
    %11 = tpu.matmul %7, %6, %cst_10 {dimension_numbers = #tpu.dot_dimension_numbers<[1], [0], [0], [1], [0, 0, 1, 1], [], []>} : vector<2x32xf32>, vector<32x128xf32>, vector<2x128xf32> -> vector<2x128xf32>
    %12 = arith.addf %10, %11 : vector<2x128xf32>
    %13 = arith.negf %12 : vector<2x128xf32>
    %14 = math.exp %13 : vector<2x128xf32>
    %cst_11 = arith.constant 1.000000e+00 : f32
    %15 = vector.broadcast %cst_11 : f32 to vector<2x128xf32>
    %16 = arith.addf %15, %14 : vector<2x128xf32>
    %17 = arith.divf %15, %16 : vector<2x128xf32>
    %18 = vector.extract_strided_slice %17 {offsets = [0, 0], sizes = [2, 32], strides = [1, 1]} : vector<2x128xf32> to vector<2x32xf32>
    %19 = vector.extract_strided_slice %17 {offsets = [0, 32], sizes = [2, 32], strides = [1, 1]} : vector<2x128xf32> to vector<2x32xf32>
    %20 = vector.extract_strided_slice %17 {offsets = [0, 96], sizes = [2, 32], strides = [1, 1]} : vector<2x128xf32> to vector<2x32xf32>
    %21 = vector.extract_strided_slice %12 {offsets = [0, 64], sizes = [2, 32], strides = [1, 1]} : vector<2x128xf32> to vector<2x32xf32>
    %22 = math.tanh %21 : vector<2x32xf32>
    %23 = arith.mulf %19, %8 : vector<2x32xf32>
    %24 = arith.mulf %18, %22 : vector<2x32xf32>
    %25 = arith.addf %23, %24 : vector<2x32xf32>
    %26 = math.tanh %25 : vector<2x32xf32>
    %27 = arith.mulf %20, %26 : vector<2x32xf32>
    %c0_12 = arith.constant 0 : index
    %c0_13 = arith.constant 0 : index
    %28 = vector.load %arg4[%c0_12, %c0_13] : memref<256x16xf32, #tpu.memory_space<vmem>>, vector<32x16xf32>
    %cst_14 = arith.constant dense<0.000000e+00> : vector<2x16xf32>
    %29 = tpu.matmul %27, %28, %cst_14 {dimension_numbers = #tpu.dot_dimension_numbers<[1], [0], [0], [1], [0, 0, 1, 1], [], []>} : vector<2x32xf32>, vector<32x16xf32>, vector<2x16xf32> -> vector<2x16xf32>
    %30 = arith.addf %9, %29 : vector<2x16xf32>
    %31 = vector.extract_strided_slice %5 {offsets = [2, 0], sizes = [2, 128], strides = [1, 1]} : vector<16x128xf32> to vector<2x128xf32>
    %cst_15 = arith.constant dense<0.000000e+00> : vector<2x128xf32>
    %32 = tpu.matmul %27, %6, %cst_15 {dimension_numbers = #tpu.dot_dimension_numbers<[1], [0], [0], [1], [0, 0, 1, 1], [], []>} : vector<2x32xf32>, vector<32x128xf32>, vector<2x128xf32> -> vector<2x128xf32>
    %33 = arith.addf %31, %32 : vector<2x128xf32>
    %34 = arith.negf %33 : vector<2x128xf32>
    %35 = math.exp %34 : vector<2x128xf32>
    %cst_16 = arith.constant 1.000000e+00 : f32
    %36 = vector.broadcast %cst_16 : f32 to vector<2x128xf32>
    %37 = arith.addf %36, %35 : vector<2x128xf32>
    %38 = arith.divf %36, %37 : vector<2x128xf32>
    %39 = vector.extract_strided_slice %38 {offsets = [0, 0], sizes = [2, 32], strides = [1, 1]} : vector<2x128xf32> to vector<2x32xf32>
    %40 = vector.extract_strided_slice %38 {offsets = [0, 32], sizes = [2, 32], strides = [1, 1]} : vector<2x128xf32> to vector<2x32xf32>
    %41 = vector.extract_strided_slice %38 {offsets = [0, 96], sizes = [2, 32], strides = [1, 1]} : vector<2x128xf32> to vector<2x32xf32>
    %42 = vector.extract_strided_slice %33 {offsets = [0, 64], sizes = [2, 32], strides = [1, 1]} : vector<2x128xf32> to vector<2x32xf32>
    %43 = math.tanh %42 : vector<2x32xf32>
    %44 = arith.mulf %40, %25 : vector<2x32xf32>
    %45 = arith.mulf %39, %43 : vector<2x32xf32>
    %46 = arith.addf %44, %45 : vector<2x32xf32>
    %47 = math.tanh %46 : vector<2x32xf32>
    %48 = arith.mulf %41, %47 : vector<2x32xf32>
    %c32 = arith.constant 32 : index
    %c0_17 = arith.constant 0 : index
    %49 = vector.load %arg4[%c32, %c0_17] : memref<256x16xf32, #tpu.memory_space<vmem>>, vector<32x16xf32>
    %cst_18 = arith.constant dense<0.000000e+00> : vector<2x16xf32>
    %50 = tpu.matmul %48, %49, %cst_18 {dimension_numbers = #tpu.dot_dimension_numbers<[1], [0], [0], [1], [0, 0, 1, 1], [], []>} : vector<2x32xf32>, vector<32x16xf32>, vector<2x16xf32> -> vector<2x16xf32>
    %51 = arith.addf %30, %50 : vector<2x16xf32>
    %52 = vector.extract_strided_slice %5 {offsets = [4, 0], sizes = [2, 128], strides = [1, 1]} : vector<16x128xf32> to vector<2x128xf32>
    %cst_19 = arith.constant dense<0.000000e+00> : vector<2x128xf32>
    %53 = tpu.matmul %48, %6, %cst_19 {dimension_numbers = #tpu.dot_dimension_numbers<[1], [0], [0], [1], [0, 0, 1, 1], [], []>} : vector<2x32xf32>, vector<32x128xf32>, vector<2x128xf32> -> vector<2x128xf32>
    %54 = arith.addf %52, %53 : vector<2x128xf32>
    %55 = arith.negf %54 : vector<2x128xf32>
    %56 = math.exp %55 : vector<2x128xf32>
    %cst_20 = arith.constant 1.000000e+00 : f32
    %57 = vector.broadcast %cst_20 : f32 to vector<2x128xf32>
    %58 = arith.addf %57, %56 : vector<2x128xf32>
    %59 = arith.divf %57, %58 : vector<2x128xf32>
    %60 = vector.extract_strided_slice %59 {offsets = [0, 0], sizes = [2, 32], strides = [1, 1]} : vector<2x128xf32> to vector<2x32xf32>
    %61 = vector.extract_strided_slice %59 {offsets = [0, 32], sizes = [2, 32], strides = [1, 1]} : vector<2x128xf32> to vector<2x32xf32>
    %62 = vector.extract_strided_slice %59 {offsets = [0, 96], sizes = [2, 32], strides = [1, 1]} : vector<2x128xf32> to vector<2x32xf32>
    %63 = vector.extract_strided_slice %54 {offsets = [0, 64], sizes = [2, 32], strides = [1, 1]} : vector<2x128xf32> to vector<2x32xf32>
    %64 = math.tanh %63 : vector<2x32xf32>
    %65 = arith.mulf %61, %46 : vector<2x32xf32>
    %66 = arith.mulf %60, %64 : vector<2x32xf32>
    %67 = arith.addf %65, %66 : vector<2x32xf32>
    %68 = math.tanh %67 : vector<2x32xf32>
    %69 = arith.mulf %62, %68 : vector<2x32xf32>
    %c64 = arith.constant 64 : index
    %c0_21 = arith.constant 0 : index
    %70 = vector.load %arg4[%c64, %c0_21] : memref<256x16xf32, #tpu.memory_space<vmem>>, vector<32x16xf32>
    %cst_22 = arith.constant dense<0.000000e+00> : vector<2x16xf32>
    %71 = tpu.matmul %69, %70, %cst_22 {dimension_numbers = #tpu.dot_dimension_numbers<[1], [0], [0], [1], [0, 0, 1, 1], [], []>} : vector<2x32xf32>, vector<32x16xf32>, vector<2x16xf32> -> vector<2x16xf32>
    %72 = arith.addf %51, %71 : vector<2x16xf32>
    %73 = vector.extract_strided_slice %5 {offsets = [6, 0], sizes = [2, 128], strides = [1, 1]} : vector<16x128xf32> to vector<2x128xf32>
    %cst_23 = arith.constant dense<0.000000e+00> : vector<2x128xf32>
    %74 = tpu.matmul %69, %6, %cst_23 {dimension_numbers = #tpu.dot_dimension_numbers<[1], [0], [0], [1], [0, 0, 1, 1], [], []>} : vector<2x32xf32>, vector<32x128xf32>, vector<2x128xf32> -> vector<2x128xf32>
    %75 = arith.addf %73, %74 : vector<2x128xf32>
    %76 = arith.negf %75 : vector<2x128xf32>
    %77 = math.exp %76 : vector<2x128xf32>
    %cst_24 = arith.constant 1.000000e+00 : f32
    %78 = vector.broadcast %cst_24 : f32 to vector<2x128xf32>
    %79 = arith.addf %78, %77 : vector<2x128xf32>
    %80 = arith.divf %78, %79 : vector<2x128xf32>
    %81 = vector.extract_strided_slice %80 {offsets = [0, 0], sizes = [2, 32], strides = [1, 1]} : vector<2x128xf32> to vector<2x32xf32>
    %82 = vector.extract_strided_slice %80 {offsets = [0, 32], sizes = [2, 32], strides = [1, 1]} : vector<2x128xf32> to vector<2x32xf32>
    %83 = vector.extract_strided_slice %80 {offsets = [0, 96], sizes = [2, 32], strides = [1, 1]} : vector<2x128xf32> to vector<2x32xf32>
    %84 = vector.extract_strided_slice %75 {offsets = [0, 64], sizes = [2, 32], strides = [1, 1]} : vector<2x128xf32> to vector<2x32xf32>
    %85 = math.tanh %84 : vector<2x32xf32>
    %86 = arith.mulf %82, %67 : vector<2x32xf32>
    %87 = arith.mulf %81, %85 : vector<2x32xf32>
    %88 = arith.addf %86, %87 : vector<2x32xf32>
    %89 = math.tanh %88 : vector<2x32xf32>
    %90 = arith.mulf %83, %89 : vector<2x32xf32>
    %c96 = arith.constant 96 : index
    %c0_25 = arith.constant 0 : index
    %91 = vector.load %arg4[%c96, %c0_25] : memref<256x16xf32, #tpu.memory_space<vmem>>, vector<32x16xf32>
    %cst_26 = arith.constant dense<0.000000e+00> : vector<2x16xf32>
    %92 = tpu.matmul %90, %91, %cst_26 {dimension_numbers = #tpu.dot_dimension_numbers<[1], [0], [0], [1], [0, 0, 1, 1], [], []>} : vector<2x32xf32>, vector<32x16xf32>, vector<2x16xf32> -> vector<2x16xf32>
    %93 = arith.addf %72, %92 : vector<2x16xf32>
    %94 = vector.extract_strided_slice %5 {offsets = [8, 0], sizes = [2, 128], strides = [1, 1]} : vector<16x128xf32> to vector<2x128xf32>
    %cst_27 = arith.constant dense<0.000000e+00> : vector<2x128xf32>
    %95 = tpu.matmul %90, %6, %cst_27 {dimension_numbers = #tpu.dot_dimension_numbers<[1], [0], [0], [1], [0, 0, 1, 1], [], []>} : vector<2x32xf32>, vector<32x128xf32>, vector<2x128xf32> -> vector<2x128xf32>
    %96 = arith.addf %94, %95 : vector<2x128xf32>
    %97 = arith.negf %96 : vector<2x128xf32>
    %98 = math.exp %97 : vector<2x128xf32>
    %cst_28 = arith.constant 1.000000e+00 : f32
    %99 = vector.broadcast %cst_28 : f32 to vector<2x128xf32>
    %100 = arith.addf %99, %98 : vector<2x128xf32>
    %101 = arith.divf %99, %100 : vector<2x128xf32>
    %102 = vector.extract_strided_slice %101 {offsets = [0, 0], sizes = [2, 32], strides = [1, 1]} : vector<2x128xf32> to vector<2x32xf32>
    %103 = vector.extract_strided_slice %101 {offsets = [0, 32], sizes = [2, 32], strides = [1, 1]} : vector<2x128xf32> to vector<2x32xf32>
    %104 = vector.extract_strided_slice %101 {offsets = [0, 96], sizes = [2, 32], strides = [1, 1]} : vector<2x128xf32> to vector<2x32xf32>
    %105 = vector.extract_strided_slice %96 {offsets = [0, 64], sizes = [2, 32], strides = [1, 1]} : vector<2x128xf32> to vector<2x32xf32>
    %106 = math.tanh %105 : vector<2x32xf32>
    %107 = arith.mulf %103, %88 : vector<2x32xf32>
    %108 = arith.mulf %102, %106 : vector<2x32xf32>
    %109 = arith.addf %107, %108 : vector<2x32xf32>
    %110 = math.tanh %109 : vector<2x32xf32>
    %111 = arith.mulf %104, %110 : vector<2x32xf32>
    %c128 = arith.constant 128 : index
    %c0_29 = arith.constant 0 : index
    %112 = vector.load %arg4[%c128, %c0_29] : memref<256x16xf32, #tpu.memory_space<vmem>>, vector<32x16xf32>
    %cst_30 = arith.constant dense<0.000000e+00> : vector<2x16xf32>
    %113 = tpu.matmul %111, %112, %cst_30 {dimension_numbers = #tpu.dot_dimension_numbers<[1], [0], [0], [1], [0, 0, 1, 1], [], []>} : vector<2x32xf32>, vector<32x16xf32>, vector<2x16xf32> -> vector<2x16xf32>
    %114 = arith.addf %93, %113 : vector<2x16xf32>
    %115 = vector.extract_strided_slice %5 {offsets = [10, 0], sizes = [2, 128], strides = [1, 1]} : vector<16x128xf32> to vector<2x128xf32>
    %cst_31 = arith.constant dense<0.000000e+00> : vector<2x128xf32>
    %116 = tpu.matmul %111, %6, %cst_31 {dimension_numbers = #tpu.dot_dimension_numbers<[1], [0], [0], [1], [0, 0, 1, 1], [], []>} : vector<2x32xf32>, vector<32x128xf32>, vector<2x128xf32> -> vector<2x128xf32>
    %117 = arith.addf %115, %116 : vector<2x128xf32>
    %118 = arith.negf %117 : vector<2x128xf32>
    %119 = math.exp %118 : vector<2x128xf32>
    %cst_32 = arith.constant 1.000000e+00 : f32
    %120 = vector.broadcast %cst_32 : f32 to vector<2x128xf32>
    %121 = arith.addf %120, %119 : vector<2x128xf32>
    %122 = arith.divf %120, %121 : vector<2x128xf32>
    %123 = vector.extract_strided_slice %122 {offsets = [0, 0], sizes = [2, 32], strides = [1, 1]} : vector<2x128xf32> to vector<2x32xf32>
    %124 = vector.extract_strided_slice %122 {offsets = [0, 32], sizes = [2, 32], strides = [1, 1]} : vector<2x128xf32> to vector<2x32xf32>
    %125 = vector.extract_strided_slice %122 {offsets = [0, 96], sizes = [2, 32], strides = [1, 1]} : vector<2x128xf32> to vector<2x32xf32>
    %126 = vector.extract_strided_slice %117 {offsets = [0, 64], sizes = [2, 32], strides = [1, 1]} : vector<2x128xf32> to vector<2x32xf32>
    %127 = math.tanh %126 : vector<2x32xf32>
    %128 = arith.mulf %124, %109 : vector<2x32xf32>
    %129 = arith.mulf %123, %127 : vector<2x32xf32>
    %130 = arith.addf %128, %129 : vector<2x32xf32>
    %131 = math.tanh %130 : vector<2x32xf32>
    %132 = arith.mulf %125, %131 : vector<2x32xf32>
    %c160 = arith.constant 160 : index
    %c0_33 = arith.constant 0 : index
    %133 = vector.load %arg4[%c160, %c0_33] : memref<256x16xf32, #tpu.memory_space<vmem>>, vector<32x16xf32>
    %cst_34 = arith.constant dense<0.000000e+00> : vector<2x16xf32>
    %134 = tpu.matmul %132, %133, %cst_34 {dimension_numbers = #tpu.dot_dimension_numbers<[1], [0], [0], [1], [0, 0, 1, 1], [], []>} : vector<2x32xf32>, vector<32x16xf32>, vector<2x16xf32> -> vector<2x16xf32>
    %135 = arith.addf %114, %134 : vector<2x16xf32>
    %136 = vector.extract_strided_slice %5 {offsets = [12, 0], sizes = [2, 128], strides = [1, 1]} : vector<16x128xf32> to vector<2x128xf32>
    %cst_35 = arith.constant dense<0.000000e+00> : vector<2x128xf32>
    %137 = tpu.matmul %132, %6, %cst_35 {dimension_numbers = #tpu.dot_dimension_numbers<[1], [0], [0], [1], [0, 0, 1, 1], [], []>} : vector<2x32xf32>, vector<32x128xf32>, vector<2x128xf32> -> vector<2x128xf32>
    %138 = arith.addf %136, %137 : vector<2x128xf32>
    %139 = arith.negf %138 : vector<2x128xf32>
    %140 = math.exp %139 : vector<2x128xf32>
    %cst_36 = arith.constant 1.000000e+00 : f32
    %141 = vector.broadcast %cst_36 : f32 to vector<2x128xf32>
    %142 = arith.addf %141, %140 : vector<2x128xf32>
    %143 = arith.divf %141, %142 : vector<2x128xf32>
    %144 = vector.extract_strided_slice %143 {offsets = [0, 0], sizes = [2, 32], strides = [1, 1]} : vector<2x128xf32> to vector<2x32xf32>
    %145 = vector.extract_strided_slice %143 {offsets = [0, 32], sizes = [2, 32], strides = [1, 1]} : vector<2x128xf32> to vector<2x32xf32>
    %146 = vector.extract_strided_slice %143 {offsets = [0, 96], sizes = [2, 32], strides = [1, 1]} : vector<2x128xf32> to vector<2x32xf32>
    %147 = vector.extract_strided_slice %138 {offsets = [0, 64], sizes = [2, 32], strides = [1, 1]} : vector<2x128xf32> to vector<2x32xf32>
    %148 = math.tanh %147 : vector<2x32xf32>
    %149 = arith.mulf %145, %130 : vector<2x32xf32>
    %150 = arith.mulf %144, %148 : vector<2x32xf32>
    %151 = arith.addf %149, %150 : vector<2x32xf32>
    %152 = math.tanh %151 : vector<2x32xf32>
    %153 = arith.mulf %146, %152 : vector<2x32xf32>
    %c192 = arith.constant 192 : index
    %c0_37 = arith.constant 0 : index
    %154 = vector.load %arg4[%c192, %c0_37] : memref<256x16xf32, #tpu.memory_space<vmem>>, vector<32x16xf32>
    %cst_38 = arith.constant dense<0.000000e+00> : vector<2x16xf32>
    %155 = tpu.matmul %153, %154, %cst_38 {dimension_numbers = #tpu.dot_dimension_numbers<[1], [0], [0], [1], [0, 0, 1, 1], [], []>} : vector<2x32xf32>, vector<32x16xf32>, vector<2x16xf32> -> vector<2x16xf32>
    %156 = arith.addf %135, %155 : vector<2x16xf32>
    %157 = vector.extract_strided_slice %5 {offsets = [14, 0], sizes = [2, 128], strides = [1, 1]} : vector<16x128xf32> to vector<2x128xf32>
    %cst_39 = arith.constant dense<0.000000e+00> : vector<2x128xf32>
    %158 = tpu.matmul %153, %6, %cst_39 {dimension_numbers = #tpu.dot_dimension_numbers<[1], [0], [0], [1], [0, 0, 1, 1], [], []>} : vector<2x32xf32>, vector<32x128xf32>, vector<2x128xf32> -> vector<2x128xf32>
    %159 = arith.addf %157, %158 : vector<2x128xf32>
    %160 = arith.negf %159 : vector<2x128xf32>
    %161 = math.exp %160 : vector<2x128xf32>
    %cst_40 = arith.constant 1.000000e+00 : f32
    %162 = vector.broadcast %cst_40 : f32 to vector<2x128xf32>
    %163 = arith.addf %162, %161 : vector<2x128xf32>
    %164 = arith.divf %162, %163 : vector<2x128xf32>
    %165 = vector.extract_strided_slice %164 {offsets = [0, 0], sizes = [2, 32], strides = [1, 1]} : vector<2x128xf32> to vector<2x32xf32>
    %166 = vector.extract_strided_slice %164 {offsets = [0, 32], sizes = [2, 32], strides = [1, 1]} : vector<2x128xf32> to vector<2x32xf32>
    %167 = vector.extract_strided_slice %164 {offsets = [0, 96], sizes = [2, 32], strides = [1, 1]} : vector<2x128xf32> to vector<2x32xf32>
    %168 = vector.extract_strided_slice %159 {offsets = [0, 64], sizes = [2, 32], strides = [1, 1]} : vector<2x128xf32> to vector<2x32xf32>
    %169 = math.tanh %168 : vector<2x32xf32>
    %170 = arith.mulf %166, %151 : vector<2x32xf32>
    %171 = arith.mulf %165, %169 : vector<2x32xf32>
    %172 = arith.addf %170, %171 : vector<2x32xf32>
    %173 = math.tanh %172 : vector<2x32xf32>
    %174 = arith.mulf %167, %173 : vector<2x32xf32>
    %c224 = arith.constant 224 : index
    %c0_41 = arith.constant 0 : index
    %175 = vector.load %arg4[%c224, %c0_41] : memref<256x16xf32, #tpu.memory_space<vmem>>, vector<32x16xf32>
    %cst_42 = arith.constant dense<0.000000e+00> : vector<2x16xf32>
    %176 = tpu.matmul %174, %175, %cst_42 {dimension_numbers = #tpu.dot_dimension_numbers<[1], [0], [0], [1], [0, 0, 1, 1], [], []>} : vector<2x32xf32>, vector<32x16xf32>, vector<2x16xf32> -> vector<2x16xf32>
    %177 = arith.addf %156, %176 : vector<2x16xf32>
    %c0_43 = arith.constant 0 : index
    %c0_44 = arith.constant 0 : index
    %178 = vector.load %arg5[%c0_43, %c0_44] : memref<1x16xf32, #tpu.memory_space<vmem>>, vector<1x16xf32>
    %179 = vector.broadcast %178 : vector<1x16xf32> to vector<2x16xf32>
    %180 = arith.addf %177, %179 : vector<2x16xf32>
    %c0_45 = arith.constant 0 : index
    %c0_46 = arith.constant 0 : index
    %181 = vector.load %arg6[%c0_45, %c0_46] : memref<2x16xf32, #tpu.memory_space<vmem>>, vector<2x16xf32>
    tpu.vector_store %arg6[%c0_45, %c0_46], %180 {strides = array<i32>} : memref<2x16xf32, #tpu.memory_space<vmem>>, vector<2x16xf32>,
    return
  }
}

</mosaic_0001>

<bundles_post_ra>
// kernel: leads_predictor_forward.1
= control target key start
LH: loop header
LB: loop body
LE: loop exit
PB: predicated region body
PF: predicated region fallthrough
CT: control target
= control target key end

     0   :  { %vm41_vm0 = vcmask 1043456   ;;  %vm34_vm1 = vcmask 31744   ;;  %v1978_v2 = vmov 0.0   ;;  %s2343_s0 = inlined_call_operand.vmem [shape: f32[16,4], index: 0, kind: input, shape index: {}]   ;;  %s2344_s1 = inlined_call_operand.vmem [shape: f32[4,128], index: 1, kind: input, shape index: {}]   ;;  %s2345_s2 = inlined_call_operand.vmem [shape: f32[32,128], index: 2, kind: input, shape index: {}]   ;;  %s2346_s3 = inlined_call_operand.vmem [shape: f32[1,128], index: 3, kind: input, shape index: {}]   ;;  %s2347_s4 = inlined_call_operand.vmem [shape: f32[256,16], index: 4, kind: input, shape index: {}]   ;;  %s2348_s5 = inlined_call_operand.vmem [shape: f32[1,16], index: 5, kind: input, shape index: {}]   ;;  %s2349_s6 = inlined_call_operand.hbm [shape: f32[2,16], index: 6, kind: output, shape index: {}]  }
   0x1   :  { %v26_v0 = vld [vmem:[%s2344_s1] sm:$0xf]  ;;  %1711 = vmatprep.subr.mxu1 %v1978_v2  ;;  %v2028_v3 = vld [vmem:[%s2345_s2 + $0x18] sm:$0xff]  ;;  %v25_v4 = vld [vmem:[%s2343_s0 + $0x8] sm:$0xff] }
   0x2   :  { %v24_v1 = vld [vmem:[%s2343_s0] sm:$0xff]  ;;  %1706 = vmatprep.subr.msk.mxu0 %vm41_vm0, %v26_v0  ;;  %v2036_v5 = vld [vmem:[%s2345_s2 + $0x10] sm:$0xff] }
   0x3   :  { %1707 = vmatpush3.msk.msra.mxu0 %vm41_vm0, %v26_v0  ;;  %1708 = vmatprep.mubr.msk.f32.mxu0 %vm34_vm1, %v24_v1 }
   0x4   :  { %11 = vsyncpa [#allocation3], 0  ;;  %1712 = vmatpush3.msra.mxu1 %v2028_v3  ;;  %1709 = vmatmul.mubr.msk.f32.vlgmr.msra.gmra.mxu0 %vm34_vm1, %v25_v4  ;;  %v2043_v6 = vld [vmem:[%s2345_s2 + $0x8] sm:$0xff]  ;;  %vm1979_vm2 = vmmov 0   ;;  %v2053_v7 = vld [vmem:[%s2345_s2] sm:$0xff]  ;;  %s1980_s10 = smov 64  }
   0x5   :  { %1713 = vmatprep.subr.mxu1 %v1978_v2  ;;  %1719 = vmatprep.mubr.msk.f32.mxu1 %vm1979_vm2, %v1978_v2  ;;  %v1595_v8 = vld [vmem:[%s2346_s3] ss:$0 sm:$0xff]  ;;  %s1981_s3 = smov 32   ;;  %vm124_vm3 = vcmask 261120   ;;  %v226_v29 = vld [vmem:[%s2347_s4 + $0x18] sm:$0xff]  ;;  %v225_v31 = vld [vmem:[%s2347_s4 + $0x10] sm:$0xff] }
   0x6   :  { %1714 = vmatpush3.msra.mxu1 %v2036_v5  ;;  %1722 = vmatprep.subr.mxu0 %v1978_v2  ;;  %v224_v32 = vld [vmem:[%s2347_s4 + $0x8] sm:$0xff]  ;;  %v223_v33 = vld [vmem:[%s2347_s4] sm:$0xff]  ;;  %v336_v51 = vld [vmem:[%s2347_s4 + $0x38] sm:$0xff]  ;;  %vm1579_vm4 = vcmask 123904  }
   0x7   :  { %1715 = vmatprep.subr.mxu1 %v1978_v2  ;;  %1723 = vmatpush3.msra.mxu0 %v2028_v3  ;;  %v335_v52 = vld [vmem:[%s2347_s4 + $0x30] sm:$0xff]  ;;  %v334_v53 = vld [vmem:[%s2347_s4 + $0x28] sm:$0xff]  ;;  %v333_v54 = vld [vmem:[%s2347_s4 + $0x20] sm:$0xff] }
   0x8   :  { %1716 = vmatpush3.msra.mxu1 %v2043_v6  ;;  %1724 = vmatprep.subr.mxu0 %v1978_v2 }
   0x9   :  { %1717 = vmatprep.subr.mxu1 %v1978_v2  ;;  %1725 = vmatpush3.msra.mxu0 %v2036_v5 }
   0xa   :  { %1718 = vmatpush3.msra.mxu1 %v2053_v7  ;;  %1726 = vmatprep.subr.mxu0 %v1978_v2 }
   0xb   :  { %1720 = vmatmul.mubr.f32.vlgmr.msra.gmra.mxu1 %v1978_v2  ;;  %1727 = vmatpush3.msra.mxu0 %v2043_v6 }
   0xc   :  { %1728 = vmatprep.subr.mxu0 %v1978_v2  ;;  %1730 = vmatprep.mubr.msk.f32.mxu0 %vm1979_vm2, %v1978_v2 }
   0xd   :  { %1729 = vmatpush3.msra.mxu0 %v2053_v7  ;;  %1733 = vmatprep.subr.mxu1 %v1978_v2 }
   0xe   :  { %1744 = vmatprep.subr.mxu0 %v1978_v2  ;;  %1741 = vmatprep.mubr.msk.f32.mxu1 %vm1979_vm2, %v1978_v2 }
   0xf   :  { %1734 = vmatpush3.msra.mxu1 %v336_v51 }
  0x10   :  { %1735 = vmatprep.subr.mxu1 %v1978_v2 }
  0x11   :  { %1736 = vmatpush3.msra.mxu1 %v335_v52 }
  0x12   :  { %1737 = vmatprep.subr.mxu1 %v1978_v2 }
  0x13   :  { %1738 = vmatpush3.msra.mxu1 %v334_v53 }
  0x14   :  { %1739 = vmatprep.subr.mxu1 %v1978_v2 }
  0x15   :  { %1740 = vmatpush3.msra.mxu1 %v333_v54 }
  0x16   :  { %1755 = vmatprep.subr.mxu1 %v1978_v2 }
  0xc4   :  { %v1710_v9 = vpop.f32.mrf.mxu0 }
  0xc5   :  { %v2075_v10 = vadd.f32 %v1710_v9, %v1595_v8 }
  0xc6   :  { %v111_v11 = vpop.f32.mrf.mxu0 }
  0xc7   :  { %v2077_v12 = vadd.f32 %v1595_v8, %v111_v11 }
  0xcb   :  { %v194_v13 = vpop.f32.mrf.mxu1 }
  0xcc   :  { %v198_v14 = vadd.f32 %v194_v13, %v2077_v12 }
  0xcd   :  { %v1721_v15 = vpop.f32.mrf.mxu1 }
  0xce   :  { %1892 = vtanh.f32 %v198_v14  ;;  %v1599_v17 = vmul.f32 -1.442695, %v198_v14 }
  0xd0   :  { %1894 = vpow2.f32 %v1599_v17 }
  0xdb   :  { %v1893_v16 = vpop.eup %1892 }
  0xdc   :  { %208 = vrot.lane.b32.xlu0 %v1893_v16, %s1980_s10 }
  0xdd   :  { %v1895_v18 = vpop.eup %1894 }
  0xde   :  { %v202_v19 = vadd.f32 1.0, %v1895_v18 }
  0xe0   :  { %1896 = vrcp.f32 %v202_v19 }
  0xed   :  { %v1897_v20 = vpop.eup %1896 }
  0xee   :  { %v206_v23 = vmul.f32 0.0, %v1897_v20 }
 0x14e   :  { %v209_v21 = vpop.permute.xlu0 %208 }
 0x14f   :  { %v211_v22 = vmul.f32 %v1897_v20, %v209_v21  ;;  %v586_v21 = vld [vmem:[%s2347_s4 + $0x50] sm:$0xff] }
 0x151   :  { %213 = vrot.lane.b32.xlu0 %v211_v22, %s1981_s3  ;;  %v585_v22 = vld [vmem:[%s2347_s4 + $0x48] sm:$0xff] }
 0x1c3   :  { %v214_v24 = vpop.permute.xlu0 %213 }
 0x1c4   :  { %v216_v25 = vadd.f32 %v214_v24, %v206_v23  ;;  %v584_v23 = vld [vmem:[%s2347_s4 + $0x40] sm:$0xff] }
 0x1c6   :  { %1898 = vtanh.f32 %v216_v25  ;;  %v314_v47 = vrot.slane %v216_v25, 6 }
 0x1d3   :  { %v1899_v26 = vpop.eup %1898 }
 0x1d4   :  { %219 = vrot.lane.b32.xlu1 %v1899_v26, %s1980_s10 }
 0x246   :  { %v220_v27 = vpop.permute.xlu1 %219 }
 0x247   :  { %v222_v28 = vmul.f32 %v1897_v20, %v220_v27  ;;  %v587_v20 = vld [vmem:[%s2347_s4 + $0x58] sm:$0xff] }
 0x249   :  { %228 = vrot.lane.b32.xlu1 %v222_v28, %s1981_s3 }
 0x2bb   :  { %v229_v30 = vpop.permute.xlu1 %228 }
 0x2bc   :  { %1731 = vmatmul.mubr.msk.f32.vlgmr.msra.gmra.mxu0 %vm124_vm3, %v229_v30 }
 0x2bd   :  { %1745 = vmatpush3.msra.mxu0 %v226_v29  ;;  %1752 = vmatprep.mubr.msk.f32.mxu0 %vm1979_vm2, %v1978_v2 }
 0x2be   :  { %1746 = vmatprep.subr.mxu0 %v1978_v2 }
 0x2bf   :  { %1747 = vmatpush3.msra.mxu0 %v225_v31 }
 0x2c0   :  { %1748 = vmatprep.subr.mxu0 %v1978_v2 }
 0x2c1   :  { %1749 = vmatpush3.msra.mxu0 %v224_v32 }
 0x2c2   :  { %1750 = vmatprep.subr.mxu0 %v1978_v2 }
 0x2c3   :  { %1751 = vmatpush3.msra.mxu0 %v223_v33 }
 0x2c4   :  { %1753 = vmatmul.mubr.msk.f32.vlgmr.msra.gmra.mxu0 %vm124_vm3, %v229_v30  ;;  %1766 = vmatprep.subr.mxu0 %v1978_v2 }
 0x2c5   :  { %1774 = vmatprep.mubr.msk.f32.mxu0 %vm1979_vm2, %v1978_v2  ;;  %1767 = vmatpush3.msra.mxu0 %v587_v20 }
 0x2c6   :  { %1768 = vmatprep.subr.mxu0 %v1978_v2 }
 0x2c7   :  { %1769 = vmatpush3.msra.mxu0 %v586_v21 }
 0x2c8   :  { %1770 = vmatprep.subr.mxu0 %v1978_v2 }
 0x2c9   :  { %1771 = vmatpush3.msra.mxu0 %v585_v22 }
 0x2ca   :  { %1772 = vmatprep.subr.mxu0 %v1978_v2 }
 0x2cb   :  { %1773 = vmatpush3.msra.mxu0 %v584_v23 }
 0x2cc   :  { %1788 = vmatprep.subr.mxu0 %v1978_v2 }
 0x37c   :  { %v298_v34 = vpop.f32.mrf.mxu0 }
 0x37d   :  { %v303_v35 = vrot.slane %v298_v34, 6 }
 0x37e   :  { %v1732_v36 = vpop.f32.mrf.mxu0 }
 0x37f   :  { %v305_v37 = vadd.f32 %v303_v35, %v2077_v12 }
 0x381   :  { %1900 = vtanh.f32 %v305_v37  ;;  %v1601_v41 = vmul.f32 -1.442695, %v305_v37 }
 0x383   :  { %1902 = vpow2.f32 %v1601_v41 }
 0x384   :  { %v2107_v38 = vpop.f32.mrf.mxu0 }
 0x386   :  { %v1754_v39 = vpop.f32.mrf.mxu0 }
 0x38e   :  { %v1901_v40 = vpop.eup %1900 }
 0x38f   :  { %318 = vrot.lane.b32.xlu0 %v1901_v40, %s1980_s10 }
 0x390   :  { %v1903_v42 = vpop.eup %1902 }
 0x391   :  { %v309_v43 = vadd.f32 1.0, %v1903_v42 }
 0x393   :  { %1904 = vrcp.f32 %v309_v43 }
 0x3a0   :  { %v1905_v44 = vpop.eup %1904 }
 0x3a1   :  { %v316_v48 = vmul.f32 %v1905_v44, %v314_v47 }
 0x401   :  { %v319_v45 = vpop.permute.xlu0 %318 }
 0x402   :  { %v321_v46 = vmul.f32 %v1905_v44, %v319_v45 }
 0x404   :  { %323 = vrot.lane.b32.xlu1 %v321_v46, %s1981_s3 }
 0x476   :  { %v324_v49 = vpop.permute.xlu1 %323 }
 0x477   :  { %v326_v50 = vadd.f32 %v324_v49, %v316_v48  ;;  %v768_v48 = vld [vmem:[%s2347_s4 + $0x70] sm:$0xff]  ;;  %v767_v49 = vld [vmem:[%s2347_s4 + $0x68] sm:$0xff] }
 0x479   :  { %1906 = vtanh.f32 %v326_v50  ;;  %v565_v16 = vrot.slane %v326_v50, 6  ;;  %v766_v50 = vld [vmem:[%s2347_s4 + $0x60] sm:$0xff] }
 0x486   :  { %v1907_v55 = vpop.eup %1906 }
 0x487   :  { %329 = vrot.lane.b32.xlu0 %v1907_v55, %s1980_s10 }
 0x4f9   :  { %v330_v56 = vpop.permute.xlu0 %329 }
 0x4fa   :  { %v332_v57 = vmul.f32 %v1905_v44, %v330_v56 }
 0x4fc   :  { %v338_v58 = vrot.slane %v332_v57, 2 }
 0x4fe   :  { %339 = vrot.lane.b32.xlu1 %v338_v58, %s1981_s3 }
 0x570   :  { %v340_v59 = vpop.permute.xlu1 %339 }
 0x571   :  { %1742 = vmatmul.mubr.msk.f32.vlgmr.msra.gmra.mxu1 %vm124_vm3, %v340_v59 }
 0x572   :  { %1756 = vmatpush3.msra.mxu1 %v2028_v3  ;;  %1763 = vmatprep.mubr.msk.f32.mxu1 %vm1979_vm2, %v1978_v2 }
 0x573   :  { %1757 = vmatprep.subr.mxu1 %v1978_v2 }
 0x574   :  { %1758 = vmatpush3.msra.mxu1 %v2036_v5 }
 0x575   :  { %1759 = vmatprep.subr.mxu1 %v1978_v2 }
 0x576   :  { %1760 = vmatpush3.msra.mxu1 %v2043_v6 }
 0x577   :  { %1761 = vmatprep.subr.mxu1 %v1978_v2 }
 0x578   :  { %1762 = vmatpush3.msra.mxu1 %v2053_v7 }
 0x579   :  { %1764 = vmatmul.mubr.msk.f32.vlgmr.msra.gmra.mxu1 %vm124_vm3, %v340_v59  ;;  %1777 = vmatprep.subr.mxu1 %v1978_v2 }
 0x57a   :  { %1778 = vmatpush3.msra.mxu1 %v2028_v3  ;;  %1785 = vmatprep.mubr.msk.f32.mxu1 %vm1979_vm2, %v1978_v2 }
 0x57b   :  { %1779 = vmatprep.subr.mxu1 %v1978_v2 }
 0x57c   :  { %1780 = vmatpush3.msra.mxu1 %v2036_v5 }
 0x57d   :  { %1781 = vmatprep.subr.mxu1 %v1978_v2 }
 0x57e   :  { %1782 = vmatpush3.msra.mxu1 %v2043_v6 }
 0x57f   :  { %1783 = vmatprep.subr.mxu1 %v1978_v2 }
 0x580   :  { %1784 = vmatpush3.msra.mxu1 %v2053_v7 }
 0x581   :  { %1799 = vmatprep.subr.mxu1 %v1978_v2 }
 0x631   :  { %v409_v60 = vpop.f32.mrf.mxu1 }
 0x632   :  { %v480_v29 = vadd.f32 %v2107_v38, %v409_v60 }
 0x633   :  { %v1743_v61 = vpop.f32.mrf.mxu1 }
 0x639   :  { %v549_v62 = vpop.f32.mrf.mxu1 }
 0x63a   :  { %v554_v63 = vrot.slane %v549_v62, 4 }
 0x63b   :  { %v1765_v0 = vpop.f32.mrf.mxu1 }
 0x63c   :  { %v556_v1 = vadd.f32 %v554_v63, %v2077_v12 }
 0x63e   :  { %1908 = vtanh.f32 %v556_v1  ;;  %v1605_v8 = vmul.f32 -1.442695, %v556_v1 }
 0x640   :  { %1910 = vpow2.f32 %v1605_v8 }
 0x64b   :  { %v1909_v4 = vpop.eup %1908 }
 0x64c   :  { %569 = vrot.lane.b32.xlu0 %v1909_v4, %s1980_s10 }
 0x64d   :  { %v1911_v9 = vpop.eup %1910 }
 0x64e   :  { %v560_v11 = vadd.f32 1.0, %v1911_v9 }
 0x650   :  { %1912 = vrcp.f32 %v560_v11 }
 0x65d   :  { %v1913_v13 = vpop.eup %1912 }
 0x65e   :  { %v567_v17 = vmul.f32 %v1913_v13, %v565_v16  ;;  %v948_v16 = vld [vmem:[%s2347_s4 + $0x98] sm:$0xff] }
 0x6be   :  { %v570_v14 = vpop.permute.xlu0 %569 }
 0x6bf   :  { %v572_v15 = vmul.f32 %v1913_v13, %v570_v14 }
 0x6c1   :  { %574 = vrot.lane.b32.xlu1 %v572_v15, %s1981_s3 }
 0x733   :  { %v575_v18 = vpop.permute.xlu1 %574 }
 0x734   :  { %v577_v19 = vadd.f32 %v575_v18, %v567_v17  ;;  %v947_v17 = vld [vmem:[%s2347_s4 + $0x90] sm:$0xff]  ;;  %v946_v18 = vld [vmem:[%s2347_s4 + $0x88] sm:$0xff] }
 0x736   :  { %1914 = vtanh.f32 %v577_v19  ;;  %v747_v44 = vrot.slane %v577_v19, 6  ;;  %v945_v19 = vld [vmem:[%s2347_s4 + $0x80] sm:$0xff] }
 0x743   :  { %v1915_v24 = vpop.eup %1914 }
 0x744   :  { %580 = vrot.lane.b32.xlu0 %v1915_v24, %s1980_s10 }
 0x7b6   :  { %v581_v25 = vpop.permute.xlu0 %580 }
 0x7b7   :  { %v583_v26 = vmul.f32 %v1913_v13, %v581_v25 }
 0x7b9   :  { %v589_v27 = vrot.slane %v583_v26, 4 }
 0x7bb   :  { %590 = vrot.lane.b32.xlu1 %v589_v27, %s1981_s3 }
 0x82d   :  { %v591_v28 = vpop.permute.xlu1 %590 }
 0x82e   :  { %1775 = vmatmul.mubr.msk.f32.vlgmr.msra.gmra.mxu0 %vm124_vm3, %v591_v28  ;;  %1786 = vmatmul.mubr.msk.f32.vlgmr.msra.gmra.mxu1 %vm124_vm3, %v591_v28 }
 0x82f   :  { %1800 = vmatpush3.msra.mxu1 %v2028_v3  ;;  %1796 = vmatprep.mubr.msk.f32.mxu0 %vm1979_vm2, %v1978_v2 }
 0x830   :  { %1801 = vmatprep.subr.mxu1 %v1978_v2  ;;  %1807 = vmatprep.mubr.msk.f32.mxu1 %vm1979_vm2, %v1978_v2 }
 0x831   :  { %1802 = vmatpush3.msra.mxu1 %v2036_v5 }
 0x832   :  { %1803 = vmatprep.subr.mxu1 %v1978_v2 }
 0x833   :  { %1804 = vmatpush3.msra.mxu1 %v2043_v6 }
 0x834   :  { %1805 = vmatprep.subr.mxu1 %v1978_v2 }
 0x835   :  { %1806 = vmatpush3.msra.mxu1 %v2053_v7 }
 0x836   :  { %1821 = vmatprep.subr.mxu1 %v1978_v2 }
 0x8ee   :  { %v660_v30 = vpop.f32.mrf.mxu0  ;;  %v731_v31 = vpop.f32.mrf.mxu1 }
 0x8ef   :  { %v664_v32 = vadd.f32 %v660_v30, %v480_v29  ;;  %v736_v33 = vrot.slane %v731_v31, 2 }
 0x8f0   :  { %v1776_v34 = vpop.f32.mrf.mxu0  ;;  %v1787_v35 = vpop.f32.mrf.mxu1 }
 0x8f1   :  { %v738_v36 = vadd.f32 %v736_v33, %v2077_v12  ;;  %v769_v12 = vld [vmem:[%s2347_s4 + $0x78] sm:$0xff] }
 0x8f2   :  { %1789 = vmatpush3.msra.mxu0 %v769_v12 }
 0x8f3   :  { %1916 = vtanh.f32 %v738_v36  ;;  %v1608_v39 = vmul.f32 -1.442695, %v738_v36  ;;  %1790 = vmatprep.subr.mxu0 %v1978_v2 }
 0x8f4   :  { %1791 = vmatpush3.msra.mxu0 %v768_v48 }
 0x8f5   :  { %1918 = vpow2.f32 %v1608_v39  ;;  %1792 = vmatprep.subr.mxu0 %v1978_v2 }
 0x8f6   :  { %1793 = vmatpush3.msra.mxu0 %v767_v49 }
 0x8f7   :  { %1794 = vmatprep.subr.mxu0 %v1978_v2 }
 0x8f8   :  { %1795 = vmatpush3.msra.mxu0 %v766_v50 }
 0x8f9   :  { %1810 = vmatprep.subr.mxu0 %v1978_v2 }
 0x900   :  { %v1917_v37 = vpop.eup %1916 }
 0x901   :  { %751 = vrot.lane.b32.xlu0 %v1917_v37, %s1980_s10 }
 0x902   :  { %v1919_v40 = vpop.eup %1918 }
 0x903   :  { %v742_v41 = vadd.f32 1.0, %v1919_v40 }
 0x905   :  { %1920 = vrcp.f32 %v742_v41 }
 0x912   :  { %v1921_v42 = vpop.eup %1920 }
 0x913   :  { %v749_v45 = vmul.f32 %v1921_v42, %v747_v44  ;;  %v1127_v44 = vld [vmem:[%s2347_s4 + $0xa8] sm:$0xff] }
 0x973   :  { %v752_v43 = vpop.permute.xlu0 %751 }
 0x974   :  { %v754_v38 = vmul.f32 %v1921_v42, %v752_v43  ;;  %v1129_v43 = vld [vmem:[%s2347_s4 + $0xb8] sm:$0xff] }
 0x976   :  { %756 = vrot.lane.b32.xlu1 %v754_v38, %s1981_s3  ;;  %v1128_v38 = vld [vmem:[%s2347_s4 + $0xb0] sm:$0xff] }
 0x9e8   :  { %v757_v46 = vpop.permute.xlu1 %756 }
 0x9e9   :  { %v759_v47 = vadd.f32 %v757_v46, %v749_v45  ;;  %v1126_v45 = vld [vmem:[%s2347_s4 + $0xa0] sm:$0xff] }
 0x9eb   :  { %1922 = vtanh.f32 %v759_v47  ;;  %v926_v11 = vrot.slane %v759_v47, 6 }
 0x9f8   :  { %v1923_v51 = vpop.eup %1922 }
 0x9f9   :  { %762 = vrot.lane.b32.xlu0 %v1923_v51, %s1980_s10 }
 0xa6b   :  { %v763_v52 = vpop.permute.xlu0 %762 }
 0xa6c   :  { %v765_v53 = vmul.f32 %v1921_v42, %v763_v52 }
 0xa6e   :  { %v771_v54 = vrot.slane %v765_v53, 6 }
 0xa70   :  { %772 = vrot.lane.b32.xlu1 %v771_v54, %s1981_s3 }
 0xae2   :  { %v773_v55 = vpop.permute.xlu1 %772 }
 0xae3   :  { %1797 = vmatmul.mubr.msk.f32.vlgmr.msra.gmra.mxu0 %vm124_vm3, %v773_v55  ;;  %1808 = vmatmul.mubr.msk.f32.vlgmr.msra.gmra.mxu1 %vm124_vm3, %v773_v55 }
 0xae4   :  { %1822 = vmatpush3.msra.mxu1 %v2028_v3  ;;  %1818 = vmatprep.mubr.msk.f32.mxu0 %vm1979_vm2, %v1978_v2 }
 0xae5   :  { %1823 = vmatprep.subr.mxu1 %v1978_v2  ;;  %1829 = vmatprep.mubr.msk.f32.mxu1 %vm1979_vm2, %v1978_v2 }
 0xae6   :  { %1824 = vmatpush3.msra.mxu1 %v2036_v5  ;;  %1811 = vmatpush3.msra.mxu0 %v948_v16 }
 0xae7   :  { %1825 = vmatprep.subr.mxu1 %v1978_v2  ;;  %1812 = vmatprep.subr.mxu0 %v1978_v2 }
 0xae8   :  { %1826 = vmatpush3.msra.mxu1 %v2043_v6  ;;  %1813 = vmatpush3.msra.mxu0 %v947_v17 }
 0xae9   :  { %1827 = vmatprep.subr.mxu1 %v1978_v2  ;;  %1814 = vmatprep.subr.mxu0 %v1978_v2 }
 0xaea   :  { %1828 = vmatpush3.msra.mxu1 %v2053_v7  ;;  %1815 = vmatpush3.msra.mxu0 %v946_v18 }
 0xaeb   :  { %1843 = vmatprep.subr.mxu1 %v1978_v2  ;;  %1816 = vmatprep.subr.mxu0 %v1978_v2 }
 0xaec   :  { %1817 = vmatpush3.msra.mxu0 %v945_v19 }
 0xaed   :  { %1832 = vmatprep.subr.mxu0 %v1978_v2 }
 0xba3   :  { %v842_v56 = vpop.f32.mrf.mxu0  ;;  %v913_v57 = vpop.f32.mrf.mxu1 }
 0xba4   :  { %v846_v58 = vadd.f32 %v842_v56, %v664_v32  ;;  %v917_v59 = vadd.f32 %v913_v57, %v2075_v10 }
 0xba5   :  { %v1798_v60 = vpop.f32.mrf.mxu0  ;;  %v1809_v61 = vpop.f32.mrf.mxu1 }
 0xba6   :  { %1924 = vtanh.f32 %v917_v59  ;;  %v1611_v63 = vmul.f32 -1.442695, %v917_v59 }
 0xba8   :  { %1926 = vpow2.f32 %v1611_v63 }
 0xbb3   :  { %v1925_v62 = vpop.eup %1924 }
 0xbb4   :  { %930 = vrot.lane.b32.xlu0 %v1925_v62, %s1980_s10 }
 0xbb5   :  { %v1927_v0 = vpop.eup %1926 }
 0xbb6   :  { %v921_v1 = vadd.f32 1.0, %v1927_v0  ;;  %v1311_v0 = vld [vmem:[%s2347_s4 + $0xd8] sm:$0xff] }
 0xbb8   :  { %1928 = vrcp.f32 %v921_v1  ;;  %v1310_v1 = vld [vmem:[%s2347_s4 + $0xd0] sm:$0xff] }
 0xbc5   :  { %v1929_v4 = vpop.eup %1928 }
 0xbc6   :  { %v928_v13 = vmul.f32 %v1929_v4, %v926_v11 }
 0xc26   :  { %v931_v8 = vpop.permute.xlu0 %930 }
 0xc27   :  { %v933_v9 = vmul.f32 %v1929_v4, %v931_v8  ;;  %v1308_v8 = vld [vmem:[%s2347_s4 + $0xc0] sm:$0xff] }
 0xc29   :  { %935 = vrot.lane.b32.xlu1 %v933_v9, %s1981_s3 }
 0xc9b   :  { %v936_v14 = vpop.permute.xlu1 %935 }
 0xc9c   :  { %v938_v15 = vadd.f32 %v936_v14, %v928_v13 }
 0xc9e   :  { %1930 = vtanh.f32 %v938_v15  ;;  %v1107_v39 = vrot.slane %v938_v15, 6 }
 0xcab   :  { %v1931_v20 = vpop.eup %1930 }
 0xcac   :  { %941 = vrot.lane.b32.xlu0 %v1931_v20, %s1980_s10 }
 0xd1e   :  { %v942_v21 = vpop.permute.xlu0 %941 }
 0xd1f   :  { %v944_v22 = vmul.f32 %v1929_v4, %v942_v21  ;;  %v1309_v4 = vld [vmem:[%s2347_s4 + $0xc8] sm:$0xff] }
 0xd21   :  { %950 = vrot.lane.b32.xlu1 %v944_v22, %s1981_s3 }
 0xd93   :  { %v951_v23 = vpop.permute.xlu1 %950 }
 0xd94   :  { %1819 = vmatmul.mubr.msk.f32.vlgmr.msra.gmra.mxu0 %vm124_vm3, %v951_v23  ;;  %1830 = vmatmul.mubr.msk.f32.vlgmr.msra.gmra.mxu1 %vm124_vm3, %v951_v23 }
 0xd95   :  { %1844 = vmatpush3.msra.mxu1 %v2028_v3  ;;  %1840 = vmatprep.mubr.msk.f32.mxu0 %vm1979_vm2, %v1978_v2 }
 0xd96   :  { %1845 = vmatprep.subr.mxu1 %v1978_v2  ;;  %1851 = vmatprep.mubr.msk.f32.mxu1 %vm1979_vm2, %v1978_v2 }
 0xd97   :  { %1846 = vmatpush3.msra.mxu1 %v2036_v5  ;;  %1833 = vmatpush3.msra.mxu0 %v1129_v43 }
 0xd98   :  { %1847 = vmatprep.subr.mxu1 %v1978_v2  ;;  %1834 = vmatprep.subr.mxu0 %v1978_v2 }
 0xd99   :  { %1848 = vmatpush3.msra.mxu1 %v2043_v6  ;;  %1835 = vmatpush3.msra.mxu0 %v1128_v38  ;;  %v1622_v38 = vld [vmem:[%s2348_s5] ss:$0 sm:$0xff] }
 0xd9a   :  { %1849 = vmatprep.subr.mxu1 %v1978_v2  ;;  %1836 = vmatprep.subr.mxu0 %v1978_v2 }
 0xd9b   :  { %1850 = vmatpush3.msra.mxu1 %v2053_v7  ;;  %1837 = vmatpush3.msra.mxu0 %v1127_v44 }
 0xd9c   :  { %1865 = vmatprep.subr.mxu1 %v1978_v2  ;;  %1838 = vmatprep.subr.mxu0 %v1978_v2 }
 0xd9d   :  { %1839 = vmatpush3.msra.mxu0 %v1126_v45 }
 0xd9e   :  { %1854 = vmatprep.subr.mxu0 %v1978_v2 }
 0xe54   :  { %v1020_v24 = vpop.f32.mrf.mxu0  ;;  %v1091_v25 = vpop.f32.mrf.mxu1 }
 0xe55   :  { %v1024_v26 = vadd.f32 %v1020_v24, %v846_v58  ;;  %v1096_v27 = vrot.slane %v1091_v25, 6 }
 0xe56   :  { %v1820_v28 = vpop.f32.mrf.mxu0  ;;  %v1831_v29 = vpop.f32.mrf.mxu1 }
 0xe57   :  { %v1098_v30 = vadd.f32 %v1096_v27, %v2075_v10 }
 0xe59   :  { %1932 = vtanh.f32 %v1098_v30  ;;  %v1614_v32 = vmul.f32 -1.442695, %v1098_v30 }
 0xe5b   :  { %1934 = vpow2.f32 %v1614_v32 }
 0xe66   :  { %v1933_v31 = vpop.eup %1932 }
 0xe67   :  { %1111 = vrot.lane.b32.xlu0 %v1933_v31, %s1980_s10 }
 0xe68   :  { %v1935_v33 = vpop.eup %1934 }
 0xe69   :  { %v1102_v34 = vadd.f32 1.0, %v1935_v33 }
 0xe6b   :  { %1936 = vrcp.f32 %v1102_v34  ;;  %v1492_v34 = vld [vmem:[%s2347_s4 + $0xf0] sm:$0xff] }
 0xe78   :  { %v1937_v35 = vpop.eup %1936 }
 0xe79   :  { %v1109_v40 = vmul.f32 %v1937_v35, %v1107_v39 }
 0xed9   :  { %v1112_v36 = vpop.permute.xlu0 %1111 }
 0xeda   :  { %v1114_v37 = vmul.f32 %v1937_v35, %v1112_v36  ;;  %v1490_v36 = vld [vmem:[%s2347_s4 + $0xe0] sm:$0xff] }
 0xedc   :  { %1116 = vrot.lane.b32.xlu1 %v1114_v37, %s1981_s3 }
 0xf4e   :  { %v1117_v41 = vpop.permute.xlu1 %1116 }
 0xf4f   :  { %v1119_v42 = vadd.f32 %v1117_v41, %v1109_v40 }
 0xf51   :  { %1938 = vtanh.f32 %v1119_v42  ;;  %v1289_v60 = vrot.slane %v1119_v42, 6 }
 0xf5e   :  { %v1939_v46 = vpop.eup %1938 }
 0xf5f   :  { %1122 = vrot.lane.b32.xlu0 %v1939_v46, %s1980_s10 }
 0xfd1   :  { %v1123_v47 = vpop.permute.xlu0 %1122 }
 0xfd2   :  { %v1125_v12 = vmul.f32 %v1937_v35, %v1123_v47  ;;  %v1491_v35 = vld [vmem:[%s2347_s4 + $0xe8] sm:$0xff] }
 0xfd4   :  { %v1131_v48 = vrot.slane %v1125_v12, 2 }
 0xfd6   :  { %1132 = vrot.lane.b32.xlu1 %v1131_v48, %s1981_s3 }
0x1048   :  { %v1133_v49 = vpop.permute.xlu1 %1132 }
0x1049   :  { %1841 = vmatmul.mubr.msk.f32.vlgmr.msra.gmra.mxu0 %vm124_vm3, %v1133_v49  ;;  %1852 = vmatmul.mubr.msk.f32.vlgmr.msra.gmra.mxu1 %vm124_vm3, %v1133_v49 }
0x104a   :  { %1866 = vmatpush3.msra.mxu1 %v2028_v3  ;;  %1862 = vmatprep.mubr.msk.f32.mxu0 %vm1979_vm2, %v1978_v2 }
0x104b   :  { %1867 = vmatprep.subr.mxu1 %v1978_v2  ;;  %1873 = vmatprep.mubr.msk.f32.mxu1 %vm1979_vm2, %v1978_v2 }
0x104c   :  { %1868 = vmatpush3.msra.mxu1 %v2036_v5  ;;  %1855 = vmatpush3.msra.mxu0 %v1311_v0 }
0x104d   :  { %1869 = vmatprep.subr.mxu1 %v1978_v2  ;;  %1856 = vmatprep.subr.mxu0 %v1978_v2 }
0x104e   :  { %1870 = vmatpush3.msra.mxu1 %v2043_v6  ;;  %1857 = vmatpush3.msra.mxu0 %v1310_v1 }
0x104f   :  { %1871 = vmatprep.subr.mxu1 %v1978_v2  ;;  %1858 = vmatprep.subr.mxu0 %v1978_v2 }
0x1050   :  { %1872 = vmatpush3.msra.mxu1 %v2053_v7  ;;  %1859 = vmatpush3.msra.mxu0 %v1309_v4 }
0x1051   :  { %1860 = vmatprep.subr.mxu0 %v1978_v2 }
0x1052   :  { %1861 = vmatpush3.msra.mxu0 %v1308_v8 }
0x1053   :  { %1876 = vmatprep.subr.mxu0 %v1978_v2 }
0x1109   :  { %v1202_v50 = vpop.f32.mrf.mxu0  ;;  %v1273_v3 = vpop.f32.mrf.mxu1 }
0x110a   :  { %v1206_v51 = vadd.f32 %v1202_v50, %v1024_v26  ;;  %v1278_v52 = vrot.slane %v1273_v3, 4 }
0x110b   :  { %v1842_v53 = vpop.f32.mrf.mxu0  ;;  %v1853_v54 = vpop.f32.mrf.mxu1 }
0x110c   :  { %v1280_v55 = vadd.f32 %v1278_v52, %v2075_v10 }
0x110e   :  { %1940 = vtanh.f32 %v1280_v55  ;;  %v1617_v5 = vmul.f32 -1.442695, %v1280_v55 }
0x1110   :  { %1942 = vpow2.f32 %v1617_v5 }
0x111b   :  { %v1941_v56 = vpop.eup %1940 }
0x111c   :  { %1293 = vrot.lane.b32.xlu0 %v1941_v56, %s1980_s10 }
0x111d   :  { %v1943_v57 = vpop.eup %1942 }
0x111e   :  { %v1284_v6 = vadd.f32 1.0, %v1943_v57 }
0x1120   :  { %1944 = vrcp.f32 %v1284_v6 }
0x112d   :  { %v1945_v58 = vpop.eup %1944 }
0x112e   :  { %v1291_v61 = vmul.f32 %v1945_v58, %v1289_v60 }
0x118e   :  { %v1294_v59 = vpop.permute.xlu0 %1293 }
0x118f   :  { %v1296_v7 = vmul.f32 %v1945_v58, %v1294_v59 }
0x1191   :  { %1298 = vrot.lane.b32.xlu1 %v1296_v7, %s1981_s3 }
0x1203   :  { %v1299_v62 = vpop.permute.xlu1 %1298 }
0x1204   :  { %v1301_v63 = vadd.f32 %v1299_v62, %v1291_v61 }
0x1206   :  { %1946 = vtanh.f32 %v1301_v63  ;;  %v1471_v30 = vrot.slane %v1301_v63, 6 }
0x1213   :  { %v1947_v9 = vpop.eup %1946 }
0x1214   :  { %1304 = vrot.lane.b32.xlu0 %v1947_v9, %s1980_s10 }
0x1286   :  { %v1305_v11 = vpop.permute.xlu0 %1304 }
0x1287   :  { %v1307_v13 = vmul.f32 %v1945_v58, %v1305_v11 }
0x1289   :  { %v1313_v14 = vrot.slane %v1307_v13, 4 }
0x128b   :  { %1314 = vrot.lane.b32.xlu1 %v1313_v14, %s1981_s3 }
0x12fd   :  { %v1315_v15 = vpop.permute.xlu1 %1314 }
0x12fe   :  { %1863 = vmatmul.mubr.msk.f32.vlgmr.msra.gmra.mxu0 %vm124_vm3, %v1315_v15  ;;  %1874 = vmatmul.mubr.msk.f32.vlgmr.msra.gmra.mxu1 %vm124_vm3, %v1315_v15 }
0x12ff   :  { %1884 = vmatprep.mubr.msk.f32.mxu0 %vm1979_vm2, %v1978_v2 }
0x13be   :  { %v1384_v16 = vpop.f32.mrf.mxu0  ;;  %v1455_v17 = vpop.f32.mrf.mxu1 }
0x13bf   :  { %v1388_v18 = vadd.f32 %v1384_v16, %v1206_v51  ;;  %v1460_v19 = vrot.slane %v1455_v17, 2 }
0x13c0   :  { %v1864_v20 = vpop.f32.mrf.mxu0  ;;  %v1875_v21 = vpop.f32.mrf.mxu1 }
0x13c1   :  { %v1462_v22 = vadd.f32 %v1460_v19, %v2075_v10  ;;  %v1493_v10 = vld [vmem:[%s2347_s4 + $0xf8] sm:$0xff]  ;;  %s1982_s4 = smov [#allocation2]  }
0x13c2   :  { %1877 = vmatpush3.msra.mxu0 %v1493_v10  ;;  %s1587_s25 = sshll.u32 %s1982_s4, 4  ;;  %s1588_s25 = int_to_ptr.vmem [resolvable:$true] %s1587_s25 }
0x13c3   :  { %1948 = vtanh.f32 %v1462_v22  ;;  %v1620_v24 = vmul.f32 -1.442695, %v1462_v22  ;;  %1878 = vmatprep.subr.mxu0 %v1978_v2  ;;  %p1961_p1 = scmp.lt.s32.totalorder %s1588_s25, %s1588_s25 }
0x13c4   :  { %1879 = vmatpush3.msra.mxu0 %v1492_v34 }
0x13c5   :  { %1950 = vpow2.f32 %v1620_v24  ;;  %1880 = vmatprep.subr.mxu0 %v1978_v2 }
0x13c6   :  { %1881 = vmatpush3.msra.mxu0 %v1491_v35 }
0x13c7   :  { %1882 = vmatprep.subr.mxu0 %v1978_v2 }
0x13c8   :  { %1883 = vmatpush3.msra.mxu0 %v1490_v36 }
0x13d0   :  { %v1949_v23 = vpop.eup %1948 }
0x13d1   :  { %1475 = vrot.lane.b32.xlu0 %v1949_v23, %s1980_s10 }
0x13d2   :  { %v1951_v25 = vpop.eup %1950 }
0x13d3   :  { %v1466_v26 = vadd.f32 1.0, %v1951_v25 }
0x13d5   :  { %1952 = vrcp.f32 %v1466_v26 }
0x13e2   :  { %v1953_v27 = vpop.eup %1952 }
0x13e3   :  { %v1473_v31 = vmul.f32 %v1953_v27, %v1471_v30 }
0x1443   :  { %v1476_v28 = vpop.permute.xlu0 %1475 }
0x1444   :  { %v1478_v29 = vmul.f32 %v1953_v27, %v1476_v28 }
0x1446   :  { %1480 = vrot.lane.b32.xlu1 %v1478_v29, %s1981_s3 }
0x14b8   :  { %v1481_v32 = vpop.permute.xlu1 %1480 }
0x14b9   :  { %v1483_v33 = vadd.f32 %v1481_v32, %v1473_v31 }
0x14bb   :  { %1954 = vtanh.f32 %v1483_v33 }
0x14c8   :  { %v1955_v37 = vpop.eup %1954 }
0x14c9   :  { %1486 = vrot.lane.b32.xlu0 %v1955_v37, %s1980_s10  ;;  %s1956_s10 = scalar_lea.vmem %s1588_s25, 32 }
0x14ca   :  { %p1957_p0 = scmp.ne.s32.totalorder %s1588_s25, %s1956_s10  ;;  %p1962_p2 = scmp.lt.s32.totalorder %s1956_s10, %s1956_s10 }
0x14cc   :  { %p1963_p3 = por %p1962_p2, %p1961_p1 }
0x14ce   :  { %p1964_p4 = pnand %p1963_p3, %p1957_p0 }
0x153b   :  { %v1487_v39 = vpop.permute.xlu0 %1486 }
0x153c   :  { %v1489_v40 = vmul.f32 %v1953_v27, %v1487_v39 }
0x153e   :  { %v1495_v41 = vrot.slane %v1489_v40, 6 }
0x1540   :  { %1496 = vrot.lane.b32.xlu1 %v1495_v41, %s1981_s3 }
0x15b2   :  { %v1497_v42 = vpop.permute.xlu1 %1496 }
0x15b3   :  { %1885 = vmatmul.mubr.msk.f32.vlgmr.msra.gmra.mxu0 %vm124_vm3, %v1497_v42 }
0x1673   :  { %v1566_v43 = vpop.f32.mrf.mxu0 }
0x1674   :  { %v1570_v2 = vadd.f32 %v1566_v43, %v1388_v18 }
0x1675   :  { %v1886_v44 = vpop.f32.mrf.mxu0 }
0x1676   :  { %v1578_v45 = vadd.f32 %v1622_v38, %v1570_v2 }
0x1678   :  { %1580 = vst.msk [vmem:[#allocation2] sm:$0x3] %vm1579_vm4, %v1578_v45 }
0x1679   :  { %1967 = shalt.err (!%p1964_p4)
}
0x167a   :  { %1590 = dma.vmem_to_hbm [thread:$0]  %s1588_s25, 32, %s2349_s6, [#allocation3]  }
0x167b   :  { %1976 = dma.done.wait [#allocation3], 32  }
0x167c   :  { %1977 = vsyncadd [#allocation3], 4294967264 }
0x167d   :  { %1594 = vsyncpa [#allocation3], 1 }

</bundles_post_ra>
